<compile_context>
chip_gen: v7x
topology: tpu7x:2x2x1
jax: 0.10.0
libtpu: 0.0.40
codegen_flags: <defaults>
</compile_context>

<pallas_src>
import functools

import jax
import jax.numpy as jnp
from jax.experimental import pallas as pl
from jax.experimental.pallas import tpu as pltpu


def _patch_embed_kernel(x_ref, w_ref, b_ref, o_ref):
    # One M tile of tokens: (TM, K_pad) @ (K_pad, E_pad) with f32 accumulation
    # on the MXU, + (1, E_pad) f32 bias, cast to the output dtype.
    acc = jnp.dot(x_ref[...], w_ref[...], preferred_element_type=jnp.float32)
    o_ref[...] = (acc + b_ref[...]).astype(o_ref.dtype)


def _choose_tile_m(m, *, cap=256, min_steps=4):
    """Pick the token-tile size TM.

    Preference order:
      1. TM divides M exactly (no padded activations, no output slice, no
         masked partial stores),
      2. at least `min_steps` grid steps (2 per v7x TensorCore, so the
         "parallel" M axis keeps both cores double-buffered),
      3. TM as large as possible (<= cap; 256 matches the 256-deep v6e/v7x MXU,
         pass cap=128 on v5e).
    Falls back to a masked final block (still no explicit HBM pad/slice) when
    M is not a multiple of 8.
    """
    cap = max(8, cap)
    if m >= 8 and m % 8 == 0:
        divisors = [t for t in range(8, min(cap, m) + 1, 8) if m % t == 0]
        preferred = [t for t in divisors if m // t >= min_steps]
        return max(preferred) if preferred else max(divisors)
    tm = cap
    while tm > 8 and m < min_steps * tm:
        tm //= 2
    return tm


def prepare_patch_embed_params(weight, bias, *, compute_dtype=None,
                               k_pad_max_frac=0.125):
    """One-time relayout of the Conv2d parameters (hoisted out of the forward).

    weight: (E, C, p, p) -> (K_pad, E_pad) in `compute_dtype` (default: keep dtype)
    bias:   (E,)         -> (1, E_pad)     float32

    K = C*p*p; E_pad = round_up(E, 128) so the kernel's output stores are
    lane-dense (unmasked vst).  K is zero-padded to a multiple of 128 only when
    the relative overhead is <= k_pad_max_frac (e.g. patch-14 ViT: 588 -> 640);
    for small K (e.g. the toy config, K=64) padding would only add HBM traffic
    on a memory-bound kernel, so it is skipped.
    """
    E, C, ph, pw = weight.shape
    K = C * ph * pw
    E_pad = ((E + 127) // 128) * 128
    K_pad = ((K + 127) // 128) * 128
    if K_pad - K > k_pad_max_frac * K:
        K_pad = K
    w = jnp.transpose(weight.reshape(E, K))            # (K, E), (c, i, j) order
    if compute_dtype is not None:
        w = w.astype(compute_dtype)                    # hoisted per-forward cast
    w = jnp.pad(w, ((0, K_pad - K), (0, E_pad - E)))
    b = jnp.pad(bias.astype(jnp.float32), (0, E_pad - E))
    return w, b.reshape(1, E_pad)


def patch_embedding(x, w_ke, b_row, *, patch_size, embed_dim,
                    out_dtype=None, tile_m_cap=256):
    """Forward pass of PatchEmbedding.

    x:      (B, C, H, W)   NCHW, like the PyTorch module input
    w_ke:   (K_pad, E_pad) prepared weight (prepare_patch_embed_params); its
                           dtype is the MXU compute dtype (f32 or bf16 -- bf16
                           is valid on v5e/v6e/v7x, accumulation stays f32)
    b_row:  (1, E_pad)     prepared bias (f32)
    out_dtype: output dtype (default x.dtype); pass jnp.bfloat16 when the
               consumer takes bf16 -- the output write is the largest HBM stream.
    tile_m_cap: 256 for v6e/v7x (MXU depth); 128 is enough on v5e.
    returns (B, num_patches, embed_dim)
    """
    B, C, H, W = x.shape
    p = patch_size
    assert H % p == 0 and W % p == 0
    gh, gw = H // p, W // p
    num_patches = gh * gw
    K = C * p * p
    K_pad, E_pad = w_ke.shape
    assert K_pad >= K and E_pad % 128 == 0 and embed_dim <= E_pad
    compute_dtype = w_ke.dtype
    out_dtype = x.dtype if out_dtype is None else out_dtype

    # Patchify: (B,C,gh,p,gw,p) -> (B,gh,gw,C,p,p) -> (M, K), flattened in
    # (c, i, j) order to match the Conv2d OIHW weight flattening.  The cast to
    # the compute dtype happens *before* the transpose (so a materialized patch
    # matrix is already half-width for bf16), and the optional K pad is folded
    # into the same producer expression.  allow_input_fusion below lets XLA
    # fuse this relayout into the kernel's input stream when it can.
    # TODO(synk): if profiling shows xp is still materialized in HBM, move the
    # patchify into the kernel (manual DMA of (C, p, W) rows + in-VMEM flatten).
    xp = x.astype(compute_dtype).reshape(B, C, gh, p, gw, p)
    xp = jnp.transpose(xp, (0, 2, 4, 1, 3, 5)).reshape(B * num_patches, K)
    if K_pad != K:
        xp = jnp.pad(xp, ((0, 0), (0, K_pad - K)))

    M = B * num_patches
    TM = _choose_tile_m(M, cap=tile_m_cap)
    grid_m = pl.cdiv(M, TM)   # no explicit M padding; a partial last block (if
                              # any) is masked by Pallas, not copied in HBM

    in_item = jnp.dtype(compute_dtype).itemsize
    out_item = jnp.dtype(out_dtype).itemsize
    # Double-buffered x/out tiles + weight/bias (the pipeline reserves 2 buffers
    # for the constant-index operands too).  Clamp well below v7x's 64 MiB
    # physical VMEM to leave headroom for Mosaic internal scratch.
    # TODO(synk): single-buffer the constant-index weight/bias
    # (pipeline_mode=pl.Buffered(1)) if K_pad*E_pad ever pressures VMEM.
    need = (2 * TM * K_pad * in_item
            + 2 * K_pad * E_pad * in_item
            + 2 * E_pad * 4
            + 2 * TM * E_pad * out_item)
    vmem_limit = int(min(56 << 20, max(16 << 20, 2 * need)))

    out = pl.pallas_call(
        _patch_embed_kernel,
        out_shape=jax.ShapeDtypeStruct((M, E_pad), out_dtype),
        grid_spec=pltpu.PrefetchScalarGridSpec(
            num_scalar_prefetch=0,
            grid=(grid_m,),
            in_specs=[
                pl.BlockSpec((TM, K_pad), lambda i: (i, 0)),     # token tile
                pl.BlockSpec((K_pad, E_pad), lambda i: (0, 0)),  # resident weight
                pl.BlockSpec((1, E_pad), lambda i: (0, 0)),      # bias
            ],
            out_specs=pl.BlockSpec((TM, E_pad), lambda i: (i, 0)),
        ),
        compiler_params=pltpu.CompilerParams(
            dimension_semantics=("parallel",),
            vmem_limit_bytes=vmem_limit,
            allow_input_fusion=[True, False, False],
        ),
    )(xp, w_ke, b_row)

    if E_pad != embed_dim:     # lane pad exists only when embed_dim % 128 != 0
        out = out[:, :embed_dim]
    return out.reshape(B, num_patches, embed_dim)


if __name__ == "__main__":
    # Small shapes consistent with the module: img_size=16, patch_size=4,
    # in_chans=4, embed_dim=32, batch=2 -> num_patches=16, K=64, M=32.
    B, C, H, W = 2, 4, 16, 16
    p = 4
    E = 32

    key = jax.random.PRNGKey(0)
    kx, kw, kb = jax.random.split(key, 3)
    x = jax.random.normal(kx, (B, C, H, W), dtype=jnp.float32)
    weight = jax.random.normal(kw, (E, C, p, p), dtype=jnp.float32) * 0.02
    bias = jax.random.normal(kb, (E,), dtype=jnp.float32) * 0.02

    # Reference: strided conv via lax, then flatten(2).transpose(1,2).
    ref = jax.lax.conv_general_dilated(
        x, weight, window_strides=(p, p), padding="VALID",
        dimension_numbers=("NCHW", "OIHW", "NCHW"),
    ) + bias.reshape(1, E, 1, 1)
    ref = ref.reshape(B, E, -1).transpose(0, 2, 1)

    # f32 path (one-time parameter relayout kept out of the per-call path).
    w_ke, b_row = prepare_patch_embed_params(weight, bias)
    fwd = jax.jit(functools.partial(patch_embedding, patch_size=p, embed_dim=E))
    out = fwd(x, w_ke, b_row)
    jax.block_until_ready(out)
    assert out.shape == (B, (H // p) * (W // p), E)
    assert jnp.allclose(out, ref, atol=1e-4, rtol=1e-4)

    # bf16 MXU path (valid on v5e/v6e/v7x): bf16 operands stored at prep time,
    # f32 accumulation in-kernel, bf16 output to halve the output HBM stream.
    w_bf16, b_row_bf16 = prepare_patch_embed_params(
        weight, bias, compute_dtype=jnp.bfloat16)
    fwd_bf16 = jax.jit(functools.partial(
        patch_embedding, patch_size=p, embed_dim=E, out_dtype=jnp.bfloat16))
    out_bf16 = fwd_bf16(x, w_bf16, b_row_bf16)
    jax.block_until_ready(out_bf16)
    assert out_bf16.shape == (B, (H // p) * (W // p), E)
    assert out_bf16.dtype == jnp.bfloat16
    assert jnp.allclose(out_bf16.astype(jnp.float32), ref, atol=2e-2, rtol=2e-2)

    print("KERNEL_OK")
</pallas_src>

<mosaic_0001>
module attributes {stable_mosaic.version = 11 : i64} {
  func.func @_patch_embed_kernel(%arg0: i32, %arg1: memref<8x64xf32, #tpu.memory_space<vmem>>, %arg2: memref<64x128xf32, #tpu.memory_space<vmem>>, %arg3: memref<1x128xf32, #tpu.memory_space<vmem>>, %arg4: memref<8x128xf32, #tpu.memory_space<vmem>>) attributes {dimension_semantics = [#tpu.dimension_semantics<parallel>], iteration_bounds = array<i64: 4>, scalar_prefetch = 0 : i64, scratch_operands = 0 : i64, tpu.core_type = #tpu.core_type<tc>, window_params = [{transform_indices = @transform_0, window_bounds = array<i64: 8, 64>}, {pipeline_mode = #tpu.pipeline_mode<synchronous>, transform_indices = @transform_1, window_bounds = array<i64: 64, 128>}, {pipeline_mode = #tpu.pipeline_mode<synchronous>, transform_indices = @transform_2, window_bounds = array<i64: 1, 128>}, {transform_indices = @transform_3, window_bounds = array<i64: 8, 128>}]} {
    %c0 = arith.constant 0 : index
    %c0_0 = arith.constant 0 : index
    %0 = vector.load %arg1[%c0, %c0_0] : memref<8x64xf32, #tpu.memory_space<vmem>>, vector<8x64xf32>
    %c0_1 = arith.constant 0 : index
    %c0_2 = arith.constant 0 : index
    %1 = vector.load %arg2[%c0_1, %c0_2] : memref<64x128xf32, #tpu.memory_space<vmem>>, vector<64x128xf32>
    %cst = arith.constant dense<0.000000e+00> : vector<8x128xf32>
    %2 = tpu.matmul %0, %1, %cst {dimension_numbers = #tpu.dot_dimension_numbers<[1], [0], [0], [1], [0, 0, 1, 1], [], []>} : vector<8x64xf32>, vector<64x128xf32>, vector<8x128xf32> -> vector<8x128xf32>
    %c0_3 = arith.constant 0 : index
    %c0_4 = arith.constant 0 : index
    %3 = vector.load %arg3[%c0_3, %c0_4] : memref<1x128xf32, #tpu.memory_space<vmem>>, vector<1x128xf32>
    %4 = vector.broadcast %3 : vector<1x128xf32> to vector<8x128xf32>
    %5 = arith.addf %2, %4 : vector<8x128xf32>
    %c0_5 = arith.constant 0 : index
    %c0_6 = arith.constant 0 : index
    %6 = vector.load %arg4[%c0_5, %c0_6] : memref<8x128xf32, #tpu.memory_space<vmem>>, vector<8x128xf32>
    tpu.vector_store %arg4[%c0_5, %c0_6], %5 {strides = array<i32>} : memref<8x128xf32, #tpu.memory_space<vmem>>, vector<8x128xf32>,
    return
  }
  func.func @transform_0(%arg0: i32) -> (i32, i32) {
    %c0_i32 = arith.constant 0 : i32
    %c0_i32_0 = arith.constant 0 : i32
    return %arg0, %c0_i32 : i32, i32
  }
  func.func @transform_1(%arg0: i32) -> (i32, i32) {
    %c0_i32 = arith.constant 0 : i32
    %c0_i32_0 = arith.constant 0 : i32
    %c0_i32_1 = arith.constant 0 : i32
    return %c0_i32, %c0_i32_0 : i32, i32
  }
  func.func @transform_2(%arg0: i32) -> (i32, i32) {
    %c0_i32 = arith.constant 0 : i32
    %c0_i32_0 = arith.constant 0 : i32
    %c0_i32_1 = arith.constant 0 : i32
    return %c0_i32, %c0_i32_0 : i32, i32
  }
  func.func @transform_3(%arg0: i32) -> (i32, i32) {
    %c0_i32 = arith.constant 0 : i32
    %c0_i32_0 = arith.constant 0 : i32
    return %arg0, %c0_i32 : i32, i32
  }
}

</mosaic_0001>

<bundles_post_ra>
// kernel: patch_embedding.1
= control target key start
LH: loop header
LB: loop body
LE: loop exit
PB: predicated region body
PF: predicated region fallthrough
CT: control target
= control target key end

     0   :  { %8 = vsyncpa [#allocation3], 0  ;;  %s639_s0 = inlined_call_operand.vmem [shape: f32[32,64], index: 0, kind: input, shape index: {}]   ;;  %s640_s1 = inlined_call_operand.vmem [shape: f32[64,128], index: 1, kind: input, shape index: {}]   ;;  %s641_s2 = inlined_call_operand.vmem [shape: f32[1,128], index: 2, kind: input, shape index: {}]   ;;  %s642_s3 = inlined_call_operand.hbm [shape: f32[32,128], index: 3, kind: output, shape index: {}]  }
   0x1   :  { %10 = vsyncpa [#allocation3 + $0x1], 0  ;;  %s512_s12 = smov 0   ;;  %s514_s13 = smov 0  }
   0x2   :  { %s516_s14 = smov 0   ;;  %s518_s15 = smov 0  }
   0x3 LB: > { %s533_s16 = sadd.s32 4294967295, %s486_s15   ;;  %s330_s17 = sadd.s32 4294967294, %s486_s15   ;;  %s486_s15 = sphi %s518_s15, %s648_s15   ;;  %s482_s14 = sphi %s516_s14, %s647_s14   ;;  %s478_s13 = sphi %s514_s13, %s646_s13   ;;  %s474_s12 = sphi %s512_s12, %s645_s12  }
   0x4   : > { %s537_s18 = sadd.s32 1, %s486_s15   ;;  %s91_s19 = sadd.s32 1, %s482_s14 }
   0x5   : > { %s88_s20 = ssub.s32 %s486_s15, %s537_s18  ;;  %p101_p0 = scmp.ne.s32.totalorder %s482_s14, %s478_s13 }
   0x6   : > { %p89_p1 = scmp.eq.s32.totalorder %s88_s20, 0  ;;  %p102_p2 = scmp.eq.s32.totalorder %s533_s16, 3 }
   0x7   : > { %p107_p3 = scmp.ne.s32.totalorder %s478_s13, %s474_s12  ;;  %p108_p4 = scmp.eq.s32.totalorder %s330_s17, 3 }
   0x8   : > { %s548_s21 = scalar_select %p89_p1, %s482_s14, %s91_s19  }
   0x9   : > { %p550_p5 = por %p102_p2, %p101_p0  ;;  %p554_p6 = por %p108_p4, %p107_p3 }
   0xa   : > { %p333_p7 = scmp.ge.s32.totalorder %s486_s15, 1  ;;  %p139_p8 = scmp.lt.s32.totalorder %s486_s15, 5 }
   0xc   : > { %p140_p9 = pnand %p333_p7, %p139_p8 }
   0xd   : > { %v167_v0 = vld [vmem:[%s640_s1] sm:$0xff] (!%p140_p9)  ;;  %v168_v1 = vld [vmem:[%s640_s1 + $0x8] sm:$0xff] (!%p140_p9)  ;;  %v169_v2 = vld [vmem:[%s640_s1 + $0x10] sm:$0xff] (!%p140_p9)  ;;  %v488_v3 = vmov (!%p140_p9), 0.0|0.0   ;;  %vm489_vm0 = vmmov (!%p140_p9), 0   ;;  %v490_v6 = vmov (!%p140_p9), 0.0  }
   0xe   : > { %143 = sbr.rel (%p140_p9) target bundleno = 259 (0x103), region = 32  ;;  %370 = vmatprep.subr.bf16.mxu0 (!%p140_p9), %v488_v3  ;;  %v371_v4 = vpack.c.bf16 (!%p140_p9), %v168_v1, %v167_v0  ;;  %v170_v5 = vld [vmem:[%s640_s1 + $0x18] sm:$0xff] (!%p140_p9)  ;;  %367 = vmatprep.mubr.msk.f32.mxu0 (!%p140_p9), %vm489_vm0, %v490_v6  ;;  %p162_p10 = scmp.lt.s32.totalorder (!%p140_p9), %s533_s16, 3  ;;  %v171_v8 = vld [vmem:[%s640_s1 + $0x20] sm:$0xff] (!%p140_p9)  ;;  %v172_v9 = vld [vmem:[%s640_s1 + $0x28] sm:$0xff] (!%p140_p9)  ;;  %vm182_vm1 = vcmask (!%p140_p9), 523264  }
   0xf   : > { %v374_v7 = vpack.c.bf16 (!%p140_p9), %v170_v5, %v169_v2  ;;  %v377_v10 = vpack.c.bf16 (!%p140_p9), %v172_v9, %v171_v8  ;;  %v173_v11 = vld [vmem:[%s640_s1 + $0x30] sm:$0xff] (!%p140_p9)  ;;  %v174_v12 = vld [vmem:[%s640_s1 + $0x38] sm:$0xff] (!%p140_p9)  ;;  %s159_s27 = sand.u32 (!%p140_p9), 1, %s478_s13   ;;  %v336_v15 = vld [vmem:[%s641_s2] ss:$0 sm:$0xff] (!%p140_p9)  ;;  %s339_s4 = sshll.u32 (!%p140_p9), %s533_s16, 7 }
  0x10   : > { %372 = vmatpush3.bf16.msra.mxu0 (!%p140_p9), %v371_v4  ;;  %v380_v13 = vpack.c.bf16 (!%p140_p9), %v174_v12, %v173_v11  ;;  %s334_s28 = sshll.u32 (!%p140_p9), %s159_s27, 3  ;;  %s258_s10 = scalar_lea.sflag (!%p140_p9), [#allocation3], %s159_s27 }
  0x11   : > { %373 = vmatprep.subr.bf16.mxu0 (!%p140_p9), %v488_v3  ;;  %s161_s5 = scalar_lea.vmem (!%p140_p9), [#allocation2], %s334_s28 }
  0x12   : > { %s271_s6 = sshll.u32 (!%p140_p9), %s161_s5, 4  ;;  %s599_s6 = int_to_ptr.vmem [resolvable:$true] %s271_s6 }
  0x13   : > { %s424_s11 = scalar_lea.vmem (!%p140_p9), %s599_s6, 128 }
  0x14   : > { %375 = vmatpush3.bf16.msra.mxu0 (!%p140_p9), %v374_v7  ;;  %p425_p11 = scmp.ne.s32.totalorder (!%p140_p9), %s599_s6, %s424_s11 }
  0x15   : > { %s163_s9 = scalar_select %p162_p10, %s533_s16, 3  ;;  %376 = vmatprep.subr.bf16.mxu0 %v488_v3 }
  0x16   : > { %p426_p12 = pnand %p425_p11, %p550_p5  ;;  %s491_s16 = smov [#allocation2]  }
  0x17   : > { %s335_s20 = sshll.u32 %s163_s9, 3  ;;  %s597_s9 = scalar_lea.hbm %s642_s3, %s339_s4 }
  0x18   : > { %378 = vmatpush3.bf16.msra.mxu0 %v377_v10  ;;  %s165_s26 = scalar_lea.vmem %s639_s0, %s335_s20  ;;  %p427_p13 = pneg %p426_p12 }
  0x19   : > { %379 = vmatprep.subr.bf16.mxu0 %v488_v3  ;;  %v166_v14 = vld [vmem:[%s165_s26] sm:$0xff]  ;;  %s428_s17 = sshll.u32 %s491_s16, 4  ;;  %s429_s17 = int_to_ptr.vmem [resolvable:$false] %s428_s17 }
  0x1a   : > { %s430_s19 = scalar_lea.vmem %s429_s17, 256  ;;  %p431_p0 = scmp.lt.s32.totalorder %s599_s6, %s429_s17 }
  0x1b   : > { %p432_p1 = scmp.lt.s32.totalorder %s430_s19, %s424_s11 }
  0x1c   : > { %381 = vmatpush3.bf16.msra.mxu0 %v380_v13 }
  0x1d   : > { %p433_p2 = por %p432_p1, %p431_p0 }
  0x1f   : > { %368 = vmatmul.mubr.msk.f32.vlgmr.msra.gmra.mrb[0].mxu0 %vm182_vm1, %v166_v14  ;;  %p434_p3 = pnand %p433_p2, %p427_p13 }
  0xf2   : > { %v252_v16 = vpop.f32.mrb[0].mxu0 }
  0xf3   : > { %v253_v17 = vadd.f32 %v336_v15, %v252_v16  ;;  %v369_v18 = vpop.f32.mrb[1].mxu0 }
  0xf5   : > { %256 = vst [vmem:[%s161_s5] sm:$0xff] %v253_v17 }
  0xf6   : > { %437 = shalt.err (!%p434_p3)
}
  0xf7   : > { %s438_s20 = scalar_lea.hbm %s597_s9, 128  ;;  %s442_s26 = scalar_lea.hbm %s642_s3, 512 }
  0xf8   : > { %p439_p4 = scmp.ne.s32.totalorder %s597_s9, %s438_s20  ;;  %p443_p9 = scmp.lt.u32.totalorder %s597_s9, %s642_s3 }
  0xf9   : > { %p444_p10 = scmp.lt.u32.totalorder %s442_s26, %s438_s20  ;;  %p446_p12 = scmp.lt.u32.totalorder %s438_s20, %s597_s9 }
  0xfa   : > { %p440_p7 = pnand %p439_p4, %p550_p5 }
  0xfb   : > { %p445_p11 = por %p444_p10, %p443_p9 }
  0xfc   : > { %p441_p8 = pneg %p440_p7 }
  0xfd   : > { %p447_p13 = por %p446_p12, %p445_p11 }
  0xff   : > { %p448_p0 = pnand %p447_p13, %p441_p8 }
 0x101   : > { %451 = shalt.err (!%p448_p0)
}
 0x102   : > { %382 = dma.vmem_to_hbm [thread:$0]  (%p550_p5), %s599_s6, 128, %s597_s9, %s258_s10  }
 0x103 PF: > { %p388_p1 = scmp.ge.s32.totalorder %s486_s15, 2  ;;  %s283_s29 = sand.u32 1, %s474_s12  }
 0x104   : > { %s284_s30 = scalar_lea.sflag [#allocation3], %s283_s29 }
 0x105   : > { %p385_p2 = pnand %p388_p1, %p554_p6 }
 0x107   : > { %469 = dma.done.wait (!%p385_p2), %s284_s30, 128  }
 0x108   : > { %471 = vsyncadd (!%p385_p2), %s284_s30, 4294967168  ;;  %p13_p3 = scmp.ge.s32.totalorder %s537_s18, 6   ;;  %s645_s12 = smov %s478_s13 }
 0x109   : > { %s646_s13 = smov %s482_s14  ;;  %s647_s14 = smov %s548_s21 }
 0x10a   : > { %s648_s15 = smov %s537_s18  ;;  %15 = sbr.rel (!%p13_p3) target bundleno = 3 (0x3), region = 67 }
 0x111   :  { %289 = vsyncpa [#allocation3], 1 }
 0x112   :  { %291 = vsyncpa [#allocation3 + $0x1], 1 }

</bundles_post_ra>
